<compile_context>
chip_gen: v7x
topology: tpu7x:2x2x1
jax: 0.10.0
libtpu: 0.0.40
codegen_flags: <defaults>
</compile_context>

<pallas_src>
import functools
import math

import jax
import jax.numpy as jnp
import numpy as np
from jax.experimental import pallas as pl
from jax.experimental.pallas import tpu as pltpu


def _round_up(x, m):
    return ((x + m - 1) // m) * m


def _choose_tiles(n, tn_req, tk_req):
    """Pick (tn, tk, n_pad) with minimal padding.

    n_pad = round_up(n, 128) always.  tk is the largest multiple of 128 that
    is <= tk_req and divides n_pad (lane dim of the A block).  tn is the
    largest multiple of 16 that is <= tn_req, divides n_pad, and leaves at
    least 2 steps on the parallel row axis (pipelining / v7x megacore).
    """
    n_pad = _round_up(n, 128)

    tk_req = max(128, (int(tk_req) // 128) * 128)
    tk = 128
    cand = min(tk_req, n_pad)
    while cand >= 128:
        if n_pad % cand == 0:
            tk = cand
            break
        cand -= 128

    tn_cap = max(16, n_pad // 2)            # >= 2 row tiles for megacore
    tn_req = max(16, (int(tn_req) // 16) * 16)
    tn = 16
    cand = (min(tn_req, tn_cap) // 16) * 16
    while cand >= 16:
        if n_pad % cand == 0:
            tn = cand
            break
        cand -= 16

    return tn, tk, n_pad


def _vmem_limit_bytes(tn, tk, f_pad):
    """Scoped-VMEM budget for one layer call (double-buffered inputs/outputs
    plus the f32 accumulator), with 2x safety margin, capped for v7x."""
    a = tn * tk * 2
    x = tk * f_pad * 2
    w = f_pad * f_pad * 2
    b = f_pad * 4
    o = tn * f_pad * 2
    acc = tn * f_pad * 4
    need = 2 * (a + x + w + b + o) + acc
    return int(min(max(2 * need, 32 * 1024 * 1024), 64 * 1024 * 1024))


def _gcn_layer_kernel(a_ref, x_ref, w_ref, b_ref, out_ref, acc_ref, *,
                      apply_tanh):
    """One (row-tile, k-tile) grid step of act(A @ X @ W + b)."""
    # k axis (source nodes) is the reduction axis: accumulate A_tile @ X_tile
    # in an f32 VMEM scratch; project/activate/store only at the last k step.
    @pl.when(pl.program_id(1) == 0)
    def _():
        acc_ref[...] = jnp.zeros_like(acc_ref)

    acc_ref[...] += jnp.dot(a_ref[...], x_ref[...],
                            preferred_element_type=jnp.float32)

    @pl.when(pl.program_id(1) == pl.num_programs(1) - 1)
    def _():
        agg = acc_ref[...].astype(jnp.bfloat16)
        y = jnp.dot(agg, w_ref[...], preferred_element_type=jnp.float32)
        y = y + b_ref[...]
        if apply_tanh:
            y = jnp.tanh(y)
        out_ref[...] = y.astype(out_ref.dtype)   # lane-dense bf16 store


def _gcn_layer(a_bf, x_bf, w_bf, b, *, apply_tanh, tn, tk):
    n_pad = a_bf.shape[0]
    f_pad = w_bf.shape[1]
    grid = (n_pad // tn, n_pad // tk)
    kernel = functools.partial(_gcn_layer_kernel, apply_tanh=apply_tanh)
    return pl.pallas_call(
        kernel,
        out_shape=jax.ShapeDtypeStruct((n_pad, f_pad), jnp.bfloat16),
        grid_spec=pltpu.PrefetchScalarGridSpec(
            num_scalar_prefetch=0,
            grid=grid,
            in_specs=[
                pl.BlockSpec((tn, tk), lambda i, k: (i, k)),        # A tile
                pl.BlockSpec((tk, f_pad), lambda i, k: (k, 0)),     # X tile
                pl.BlockSpec((f_pad, f_pad), lambda i, k: (0, 0)),  # W (resident)
                pl.BlockSpec((1, f_pad), lambda i, k: (0, 0)),      # b (resident)
            ],
            out_specs=pl.BlockSpec((tn, f_pad), lambda i, k: (i, 0)),
            scratch_shapes=[pltpu.VMEM((tn, f_pad), jnp.float32)],
        ),
        compiler_params=pltpu.CompilerParams(
            dimension_semantics=("parallel", "arbitrary"),
            vmem_limit_bytes=_vmem_limit_bytes(tn, tk, f_pad)),
    )(a_bf, x_bf, w_bf, b)


@functools.partial(jax.jit, static_argnames=("tn", "tk"))
def gcn_forward(adj, h, weights, biases, *, tn=512, tk=2048):
    """GCN forward.  adj[dst, src] = edge weight; h: (N, F) node features.

    Returns concat([h, layer1(h), ..., layerL(...)], axis=1): (N, (L+1)*F).
    """
    n, f = h.shape
    num_layers = len(weights)

    tn, tk, n_pad = _choose_tiles(n, tn, tk)
    f_pad = _round_up(f, 128)   # lane-dense stores / MXU-friendly widths

    # Zero padding is exact: padded rows/cols/features contribute nothing to
    # the real outputs and are sliced off below.  Padded A is built directly
    # in bf16 (no f32 intermediate).  If the graph is static, hoist this pad/
    # cast out of the forward and reuse the cached bf16 adjacency.
    a_bf = jnp.zeros((n_pad, n_pad), jnp.bfloat16).at[:n, :n].set(
        adj.astype(jnp.bfloat16))
    x = jnp.zeros((n_pad, f_pad), jnp.bfloat16).at[:n, :f].set(
        h.astype(jnp.bfloat16))
    w_bf = [jnp.zeros((f_pad, f_pad), jnp.bfloat16).at[:f, :f].set(
        w.astype(jnp.bfloat16)) for w in weights]
    b_p = [jnp.zeros((1, f_pad), jnp.float32).at[0, :f].set(b) for b in biases]

    results = [h]
    for layer in range(num_layers):
        x = _gcn_layer(a_bf, x, w_bf[layer], b_p[layer],
                       apply_tanh=(layer != num_layers - 1), tn=tn, tk=tk)
        results.append(x[:n, :f].astype(jnp.float32))
    return jnp.concatenate(results, axis=1)


def reference_forward(adj, h, weights, biases):
    """Pure-JAX reference mirroring the PyTorch GCN forward with the same
    bf16-operand / f32-accumulation / bf16-activation numerics as the kernel."""
    a_bf = adj.astype(jnp.bfloat16)
    results = [h]
    x = h.astype(jnp.bfloat16)
    num_layers = len(weights)
    for layer in range(num_layers):
        agg = jnp.dot(a_bf, x, preferred_element_type=jnp.float32)
        y = jnp.dot(agg.astype(jnp.bfloat16),
                    weights[layer].astype(jnp.bfloat16),
                    preferred_element_type=jnp.float32)
        y = y + biases[layer].reshape(1, -1)
        if layer != num_layers - 1:
            y = jnp.tanh(y)
        x = y.astype(jnp.bfloat16)           # layer output is stored in bf16
        results.append(x.astype(jnp.float32))
    return jnp.concatenate(results, axis=1)


if __name__ == "__main__":
    # Small analog of the module: N=256 nodes, feature_dim=128, 3 layers.
    N, F, NUM_LAYERS = 256, 128, 3

    key = jax.random.PRNGKey(0)
    k_mask, k_wts, k_h, *k_layers = jax.random.split(key, 3 + 2 * NUM_LAYERS)

    # Dense weighted adjacency: ~10% edge density, adj[dst, src] = edge weight.
    mask = (jax.random.uniform(k_mask, (N, N)) < 0.1).astype(jnp.float32)
    adj = mask * jax.random.uniform(k_wts, (N, N)) * (16.0 / N)

    h = jax.random.normal(k_h, (N, F), jnp.float32) * 0.5
    weights = [jax.random.normal(k_layers[2 * l], (F, F), jnp.float32)
               * (2.0 / math.sqrt(F)) for l in range(NUM_LAYERS)]
    biases = [jax.random.normal(k_layers[2 * l + 1], (F,), jnp.float32) * 0.3
              for l in range(NUM_LAYERS)]

    ref = jax.block_until_ready(reference_forward(adj, h, weights, biases))

    # 1) Default (large) tiles: clamped to the padded problem -> grid (2, 1).
    out = jax.block_until_ready(gcn_forward(adj, h, weights, biases))
    assert out.shape == (N, (NUM_LAYERS + 1) * F), out.shape
    np.testing.assert_allclose(np.asarray(out), np.asarray(ref),
                               rtol=1e-2, atol=5e-3)

    # 2) Small tiles (tn=64, tk=128 -> grid (4, 2)): exercises both the
    #    parallel row axis and the multi-step reduction/accumulator path.
    out_small = jax.block_until_ready(
        gcn_forward(adj, h, weights, biases, tn=64, tk=128))
    np.testing.assert_allclose(np.asarray(out_small), np.asarray(ref),
                               rtol=1e-2, atol=5e-3)

    print("KERNEL_OK")
</pallas_src>

<mosaic_0001>
module attributes {stable_mosaic.version = 11 : i64} {
  func.func @_gcn_layer_kernel(%arg0: i32, %arg1: i32, %arg2: memref<128x256xbf16, #tpu.memory_space<vmem>>, %arg3: memref<256x128xbf16, #tpu.memory_space<vmem>>, %arg4: memref<128x128xbf16, #tpu.memory_space<vmem>>, %arg5: memref<1x128xf32, #tpu.memory_space<vmem>>, %arg6: memref<128x128xbf16, #tpu.memory_space<vmem>>, %arg7: memref<128x128xf32, #tpu.memory_space<vmem>>) attributes {dimension_semantics = [#tpu.dimension_semantics<parallel>, #tpu.dimension_semantics<arbitrary>], iteration_bounds = array<i64: 2, 1>, scalar_prefetch = 0 : i64, scratch_operands = 1 : i64, tpu.core_type = #tpu.core_type<tc>, window_params = [{transform_indices = @transform_0, window_bounds = array<i64: 128, 256>}, {transform_indices = @transform_1, window_bounds = array<i64: 256, 128>}, {pipeline_mode = #tpu.pipeline_mode<synchronous>, transform_indices = @transform_2, window_bounds = array<i64: 128, 128>}, {pipeline_mode = #tpu.pipeline_mode<synchronous>, transform_indices = @transform_3, window_bounds = array<i64: 1, 128>}, {transform_indices = @transform_4, window_bounds = array<i64: 128, 128>}]} {
    %c0_i32 = arith.constant 0 : i32
    %0 = arith.cmpi eq, %arg1, %c0_i32 : i32
    %1 = arith.extui %0 : i1 to i32
    %c0_i32_0 = arith.constant 0 : i32
    %2 = arith.cmpi ne, %1, %c0_i32_0 : i32
    scf.if %2 {
      %cst_10 = arith.constant 0.000000e+00 : f32
      %12 = vector.broadcast %cst_10 : f32 to vector<128x128xf32>
      %c0_11 = arith.constant 0 : index
      %c0_12 = arith.constant 0 : index
      %13 = vector.load %arg7[%c0_11, %c0_12] : memref<128x128xf32, #tpu.memory_space<vmem>>, vector<128x128xf32>
      tpu.vector_store %arg7[%c0_11, %c0_12], %12 {strides = array<i32>} : memref<128x128xf32, #tpu.memory_space<vmem>>, vector<128x128xf32>,
    } else {
    }
    %c0 = arith.constant 0 : index
    %c0_1 = arith.constant 0 : index
    %3 = vector.load %arg7[%c0, %c0_1] : memref<128x128xf32, #tpu.memory_space<vmem>>, vector<128x128xf32>
    %c0_2 = arith.constant 0 : index
    %c0_3 = arith.constant 0 : index
    %4 = vector.load %arg2[%c0_2, %c0_3] : memref<128x256xbf16, #tpu.memory_space<vmem>>, vector<128x256xbf16>
    %c0_4 = arith.constant 0 : index
    %c0_5 = arith.constant 0 : index
    %5 = vector.load %arg3[%c0_4, %c0_5] : memref<256x128xbf16, #tpu.memory_space<vmem>>, vector<256x128xbf16>
    %cst = arith.constant dense<0.000000e+00> : vector<128x128xf32>
    %6 = tpu.matmul %4, %5, %cst {dimension_numbers = #tpu.dot_dimension_numbers<[1], [0], [0], [1], [0, 0, 1, 1], [], []>} : vector<128x256xbf16>, vector<256x128xbf16>, vector<128x128xf32> -> vector<128x128xf32>
    %7 = arith.addf %3, %6 : vector<128x128xf32>
    %c0_6 = arith.constant 0 : index
    %c0_7 = arith.constant 0 : index
    %8 = vector.load %arg7[%c0_6, %c0_7] : memref<128x128xf32, #tpu.memory_space<vmem>>, vector<128x128xf32>
    tpu.vector_store %arg7[%c0_6, %c0_7], %7 {strides = array<i32>} : memref<128x128xf32, #tpu.memory_space<vmem>>, vector<128x128xf32>,
    %c0_i32_8 = arith.constant 0 : i32
    %9 = arith.cmpi eq, %arg1, %c0_i32_8 : i32
    %10 = arith.extui %9 : i1 to i32
    %c0_i32_9 = arith.constant 0 : i32
    %11 = arith.cmpi ne, %10, %c0_i32_9 : i32
    scf.if %11 {
      %c0_10 = arith.constant 0 : index
      %c0_11 = arith.constant 0 : index
      %12 = vector.load %arg7[%c0_10, %c0_11] : memref<128x128xf32, #tpu.memory_space<vmem>>, vector<128x128xf32>
      %13 = arith.truncf %12 : vector<128x128xf32> to vector<128x128xbf16>
      %c0_12 = arith.constant 0 : index
      %c0_13 = arith.constant 0 : index
      %14 = vector.load %arg4[%c0_12, %c0_13] : memref<128x128xbf16, #tpu.memory_space<vmem>>, vector<128x128xbf16>
      %cst_14 = arith.constant dense<0.000000e+00> : vector<128x128xf32>
      %15 = tpu.matmul %13, %14, %cst_14 {dimension_numbers = #tpu.dot_dimension_numbers<[1], [0], [0], [1], [0, 0, 1, 1], [], []>} : vector<128x128xbf16>, vector<128x128xbf16>, vector<128x128xf32> -> vector<128x128xf32>
      %c0_15 = arith.constant 0 : index
      %c0_16 = arith.constant 0 : index
      %16 = vector.load %arg5[%c0_15, %c0_16] : memref<1x128xf32, #tpu.memory_space<vmem>>, vector<1x128xf32>
      %17 = vector.broadcast %16 : vector<1x128xf32> to vector<128x128xf32>
      %18 = arith.addf %15, %17 : vector<128x128xf32>
      %19 = arith.truncf %18 : vector<128x128xf32> to vector<128x128xbf16>
      %c0_17 = arith.constant 0 : index
      %c0_18 = arith.constant 0 : index
      %20 = vector.load %arg6[%c0_17, %c0_18] : memref<128x128xbf16, #tpu.memory_space<vmem>>, vector<128x128xbf16>
      tpu.vector_store %arg6[%c0_17, %c0_18], %19 {strides = array<i32>} : memref<128x128xbf16, #tpu.memory_space<vmem>>, vector<128x128xbf16>,
    } else {
    }
    return
  }
  func.func @transform_0(%arg0: i32, %arg1: i32) -> (i32, i32) {
    %c0_i32 = arith.constant 0 : i32
    return %arg0, %arg1 : i32, i32
  }
  func.func @transform_1(%arg0: i32, %arg1: i32) -> (i32, i32) {
    %c0_i32 = arith.constant 0 : i32
    %c0_i32_0 = arith.constant 0 : i32
    return %arg1, %c0_i32 : i32, i32
  }
  func.func @transform_2(%arg0: i32, %arg1: i32) -> (i32, i32) {
    %c0_i32 = arith.constant 0 : i32
    %c0_i32_0 = arith.constant 0 : i32
    %c0_i32_1 = arith.constant 0 : i32
    return %c0_i32, %c0_i32_0 : i32, i32
  }
  func.func @transform_3(%arg0: i32, %arg1: i32) -> (i32, i32) {
    %c0_i32 = arith.constant 0 : i32
    %c0_i32_0 = arith.constant 0 : i32
    %c0_i32_1 = arith.constant 0 : i32
    return %c0_i32, %c0_i32_0 : i32, i32
  }
  func.func @transform_4(%arg0: i32, %arg1: i32) -> (i32, i32) {
    %c0_i32 = arith.constant 0 : i32
    %c0_i32_0 = arith.constant 0 : i32
    return %arg0, %c0_i32 : i32, i32
  }
}

module attributes {stable_mosaic.version = 11 : i64} {
  func.func @_gcn_layer_kernel(%arg0: i32, %arg1: i32, %arg2: memref<128x256xbf16, #tpu.memory_space<vmem>>, %arg3: memref<256x128xbf16, #tpu.memory_space<vmem>>, %arg4: memref<128x128xbf16, #tpu.memory_space<vmem>>, %arg5: memref<1x128xf32, #tpu.memory_space<vmem>>, %arg6: memref<128x128xbf16, #tpu.memory_space<vmem>>, %arg7: memref<128x128xf32, #tpu.memory_space<vmem>>) attributes {dimension_semantics = [#tpu.dimension_semantics<parallel>, #tpu.dimension_semantics<arbitrary>], iteration_bounds = array<i64: 2, 1>, scalar_prefetch = 0 : i64, scratch_operands = 1 : i64, tpu.core_type = #tpu.core_type<tc>, window_params = [{transform_indices = @transform_0, window_bounds = array<i64: 128, 256>}, {transform_indices = @transform_1, window_bounds = array<i64: 256, 128>}, {pipeline_mode = #tpu.pipeline_mode<synchronous>, transform_indices = @transform_2, window_bounds = array<i64: 128, 128>}, {pipeline_mode = #tpu.pipeline_mode<synchronous>, transform_indices = @transform_3, window_bounds = array<i64: 1, 128>}, {transform_indices = @transform_4, window_bounds = array<i64: 128, 128>}]} {
    %c0_i32 = arith.constant 0 : i32
    %0 = arith.cmpi eq, %arg1, %c0_i32 : i32
    %1 = arith.extui %0 : i1 to i32
    %c0_i32_0 = arith.constant 0 : i32
    %2 = arith.cmpi ne, %1, %c0_i32_0 : i32
    scf.if %2 {
      %cst_10 = arith.constant 0.000000e+00 : f32
      %12 = vector.broadcast %cst_10 : f32 to vector<128x128xf32>
      %c0_11 = arith.constant 0 : index
      %c0_12 = arith.constant 0 : index
      %13 = vector.load %arg7[%c0_11, %c0_12] : memref<128x128xf32, #tpu.memory_space<vmem>>, vector<128x128xf32>
      tpu.vector_store %arg7[%c0_11, %c0_12], %12 {strides = array<i32>} : memref<128x128xf32, #tpu.memory_space<vmem>>, vector<128x128xf32>,
    } else {
    }
    %c0 = arith.constant 0 : index
    %c0_1 = arith.constant 0 : index
    %3 = vector.load %arg7[%c0, %c0_1] : memref<128x128xf32, #tpu.memory_space<vmem>>, vector<128x128xf32>
    %c0_2 = arith.constant 0 : index
    %c0_3 = arith.constant 0 : index
    %4 = vector.load %arg2[%c0_2, %c0_3] : memref<128x256xbf16, #tpu.memory_space<vmem>>, vector<128x256xbf16>
    %c0_4 = arith.constant 0 : index
    %c0_5 = arith.constant 0 : index
    %5 = vector.load %arg3[%c0_4, %c0_5] : memref<256x128xbf16, #tpu.memory_space<vmem>>, vector<256x128xbf16>
    %cst = arith.constant dense<0.000000e+00> : vector<128x128xf32>
    %6 = tpu.matmul %4, %5, %cst {dimension_numbers = #tpu.dot_dimension_numbers<[1], [0], [0], [1], [0, 0, 1, 1], [], []>} : vector<128x256xbf16>, vector<256x128xbf16>, vector<128x128xf32> -> vector<128x128xf32>
    %7 = arith.addf %3, %6 : vector<128x128xf32>
    %c0_6 = arith.constant 0 : index
    %c0_7 = arith.constant 0 : index
    %8 = vector.load %arg7[%c0_6, %c0_7] : memref<128x128xf32, #tpu.memory_space<vmem>>, vector<128x128xf32>
    tpu.vector_store %arg7[%c0_6, %c0_7], %7 {strides = array<i32>} : memref<128x128xf32, #tpu.memory_space<vmem>>, vector<128x128xf32>,
    %c0_i32_8 = arith.constant 0 : i32
    %9 = arith.cmpi eq, %arg1, %c0_i32_8 : i32
    %10 = arith.extui %9 : i1 to i32
    %c0_i32_9 = arith.constant 0 : i32
    %11 = arith.cmpi ne, %10, %c0_i32_9 : i32
    scf.if %11 {
      %c0_10 = arith.constant 0 : index
      %c0_11 = arith.constant 0 : index
      %12 = vector.load %arg7[%c0_10, %c0_11] : memref<128x128xf32, #tpu.memory_space<vmem>>, vector<128x128xf32>
      %13 = arith.truncf %12 : vector<128x128xf32> to vector<128x128xbf16>
      %c0_12 = arith.constant 0 : index
      %c0_13 = arith.constant 0 : index
      %14 = vector.load %arg4[%c0_12, %c0_13] : memref<128x128xbf16, #tpu.memory_space<vmem>>, vector<128x128xbf16>
      %cst_14 = arith.constant dense<0.000000e+00> : vector<128x128xf32>
      %15 = tpu.matmul %13, %14, %cst_14 {dimension_numbers = #tpu.dot_dimension_numbers<[1], [0], [0], [1], [0, 0, 1, 1], [], []>} : vector<128x128xbf16>, vector<128x128xbf16>, vector<128x128xf32> -> vector<128x128xf32>
      %c0_15 = arith.constant 0 : index
      %c0_16 = arith.constant 0 : index
      %16 = vector.load %arg5[%c0_15, %c0_16] : memref<1x128xf32, #tpu.memory_space<vmem>>, vector<1x128xf32>
      %17 = vector.broadcast %16 : vector<1x128xf32> to vector<128x128xf32>
      %18 = arith.addf %15, %17 : vector<128x128xf32>
      %19 = math.tanh %18 : vector<128x128xf32>
      %20 = arith.truncf %19 : vector<128x128xf32> to vector<128x128xbf16>
      %c0_17 = arith.constant 0 : index
      %c0_18 = arith.constant 0 : index
      %21 = vector.load %arg6[%c0_17, %c0_18] : memref<128x128xbf16, #tpu.memory_space<vmem>>, vector<128x128xbf16>
      tpu.vector_store %arg6[%c0_17, %c0_18], %20 {strides = array<i32>} : memref<128x128xbf16, #tpu.memory_space<vmem>>, vector<128x128xbf16>,
    } else {
    }
    return
  }
  func.func @transform_0(%arg0: i32, %arg1: i32) -> (i32, i32) {
    %c0_i32 = arith.constant 0 : i32
    return %arg0, %arg1 : i32, i32
  }
  func.func @transform_1(%arg0: i32, %arg1: i32) -> (i32, i32) {
    %c0_i32 = arith.constant 0 : i32
    %c0_i32_0 = arith.constant 0 : i32
    return %arg1, %c0_i32 : i32, i32
  }
  func.func @transform_2(%arg0: i32, %arg1: i32) -> (i32, i32) {
    %c0_i32 = arith.constant 0 : i32
    %c0_i32_0 = arith.constant 0 : i32
    %c0_i32_1 = arith.constant 0 : i32
    return %c0_i32, %c0_i32_0 : i32, i32
  }
  func.func @transform_3(%arg0: i32, %arg1: i32) -> (i32, i32) {
    %c0_i32 = arith.constant 0 : i32
    %c0_i32_0 = arith.constant 0 : i32
    %c0_i32_1 = arith.constant 0 : i32
    return %c0_i32, %c0_i32_0 : i32, i32
  }
  func.func @transform_4(%arg0: i32, %arg1: i32) -> (i32, i32) {
    %c0_i32 = arith.constant 0 : i32
    %c0_i32_0 = arith.constant 0 : i32
    return %arg0, %c0_i32 : i32, i32
  }
}

</mosaic_0001>

<bundles_post_ra>
// kernel: gcn_forward.5
= control target key start
LH: loop header
LB: loop body
LE: loop exit
PB: predicated region body
PF: predicated region fallthrough
CT: control target
= control target key end

     0   :  { %s1372_s15 = smov 0   ;;  %s1374_s16 = smov 0   ;;  %s1512_s0 = inlined_call_operand.vmem [shape: bf16[256,256], index: 0, kind: input, shape index: {}]   ;;  %s1513_s1 = inlined_call_operand.vmem [shape: bf16[256,128], index: 1, kind: input, shape index: {}]   ;;  %s1514_s2 = inlined_call_operand.vmem [shape: bf16[128,128], index: 2, kind: input, shape index: {}]   ;;  %s1515_s3 = inlined_call_operand.vmem [shape: f32[1,128], index: 3, kind: input, shape index: {}]   ;;  %s1516_s4 = inlined_call_operand.vmem [shape: bf16[256,128], index: 4, kind: output, shape index: {}]  }
   0x1   :  { %s1376_s17 = smov 0  }
   0x2 LB: > { %s26_s18 = sadd.s32 1, %s1341_s16  ;;  %p1010_p0 = scmp.ge.s32.totalorder %s1345_s17, 1  ;;  %s1345_s17 = sphi %s1376_s17, %s14_s17   ;;  %s1341_s16 = sphi %s1374_s16, %s1518_s16   ;;  %s1337_s15 = sphi %s1372_s15, %s1517_s15  }
   0x3   : > { %p28_p1 = scmp.ge.s32.totalorder %s26_s18, 2  ;;  %p194_p2 = scmp.lt.s32.totalorder %s1345_s17, 3 }
   0x5   : > { %s1520_s18 = smov (%p28_p1, %s26_s18), 0  ;;  %p195_p3 = pnand %p1010_p0, %p194_p2 }
   0x6   : > { %v1275_v0 = vld [vmem:[%s1513_s1 + $0x40] sm:$0xff] (!%p195_p3)   ;;  %s1011_s21 = sshll.u32 (!%p195_p3), %s1337_s15, 4  ;;  %v1277_v2 = vld [vmem:[%s1513_s1 + $0x48] sm:$0xff] (!%p195_p3)   ;;  %v1279_v4 = vld [vmem:[%s1513_s1 + $0x50] sm:$0xff] (!%p195_p3)  }
   0x7   : > { %198 = sbr.rel (%p195_p3) target bundleno = 534 (0x216), region = 36  ;;  %v1276_v1 = vld [vmem:[%s1513_s1] sm:$0xff] (!%p195_p3)   ;;  %1139 = vmatprep.subr.bf16.mxu0 (!%p195_p3), %v1275_v0  ;;  %v1278_v3 = vld [vmem:[%s1513_s1 + $0x8] sm:$0xff] (!%p195_p3)   ;;  %p232_p4 = scmp.lt.s32.totalorder (!%p195_p3), %s1011_s21, 31  ;;  %v1280_v5 = vld [vmem:[%s1513_s1 + $0x10] sm:$0xff] (!%p195_p3)  }
   0x8   : > { %1140 = vmatpush3.bf16.msra.mxu0 (!%p195_p3), %v1276_v1  ;;  %v1281_v6 = vld [vmem:[%s1513_s1 + $0x58] sm:$0xff] (!%p195_p3)   ;;  %v1283_v8 = vld [vmem:[%s1513_s1 + $0x60] sm:$0xff] (!%p195_p3)   ;;  %v1285_v10 = vld [vmem:[%s1513_s1 + $0x68] sm:$0xff] (!%p195_p3)  }
   0x9   : > { %1141 = vmatprep.subr.bf16.mxu0 (!%p195_p3), %v1277_v2  ;;  %v1282_v7 = vld [vmem:[%s1513_s1 + $0x18] sm:$0xff] (!%p195_p3)   ;;  %v1284_v9 = vld [vmem:[%s1513_s1 + $0x20] sm:$0xff] (!%p195_p3)   ;;  %v1286_v12 = vld [vmem:[%s1513_s1 + $0x28] sm:$0xff] (!%p195_p3)  }
   0xa   : > { %v1287_v13 = vld [vmem:[%s1513_s1 + $0x70] sm:$0xff] (!%p195_p3)   ;;  %v1289_v15 = vld [vmem:[%s1513_s1 + $0x78] sm:$0xff] (!%p195_p3)   ;;  %v1315_v17 = vld [vmem:[%s1514_s2] sm:$0xff] (!%p195_p3)  }
   0xb   : > { %v1288_v14 = vld [vmem:[%s1513_s1 + $0x30] sm:$0xff] (!%p195_p3)   ;;  %v1290_v16 = vld [vmem:[%s1513_s1 + $0x38] sm:$0xff] (!%p195_p3)   ;;  %v1316_v19 = vld [vmem:[%s1514_s2 + $0x8] sm:$0xff] (!%p195_p3)   ;;  %1219 = vmatprep.subr.bf16.mxu1 (!%p195_p3), %v1315_v17 }
   0xc   : > { %1142 = vmatpush3.bf16.msra.mxu0 (!%p195_p3), %v1278_v3  ;;  %1220 = vmatpush3.bf16.msra.mxu1 (!%p195_p3), %v1315_v17  ;;  %v1317_v21 = vld [vmem:[%s1514_s2 + $0x10] sm:$0xff] (!%p195_p3)   ;;  %v1318_v22 = vld [vmem:[%s1514_s2 + $0x18] sm:$0xff] (!%p195_p3)   ;;  %v1319_v36 = vld [vmem:[%s1514_s2 + $0x20] sm:$0xff] (!%p195_p3)  }
   0xd   : > { %1143 = vmatprep.subr.bf16.mxu0 (!%p195_p3), %v1279_v4  ;;  %1221 = vmatprep.subr.bf16.mxu1 (!%p195_p3), %v1316_v19  ;;  %v1320_v37 = vld [vmem:[%s1514_s2 + $0x28] sm:$0xff] (!%p195_p3)   ;;  %v1321_v38 = vld [vmem:[%s1514_s2 + $0x30] sm:$0xff] (!%p195_p3)   ;;  %v1322_v39 = vld [vmem:[%s1514_s2 + $0x38] sm:$0xff] (!%p195_p3)  }
   0xe   : > { %s1522_s21 = smov (!%p232_p4, %s1011_s21), 31 }
   0xf   : > { %s1075_s10 = sshll.u32 %s1522_s21, 3  ;;  %s1015_s30 = sshll.u32 %s1522_s21, 2 }
  0x10   : > { %1144 = vmatpush3.bf16.msra.mxu0 %v1280_v5  ;;  %s1423_s15 = scalar_lea.vmem %s1512_s0, %s1075_s10  ;;  %1222 = vmatpush3.bf16.msra.mxu1 %v1316_v19  ;;  %s1493_s7 = scalar_lea.vmem %s1516_s4, %s1015_s30 }
  0x11   : > { %1145 = vmatprep.subr.bf16.mxu0 %v1281_v6  ;;  %v1293_v11 = vld [vmem:[%s1423_s15 + $0x4] ss:$8 sps:$4 sm:$0xff]   ;;  %v1291_v18 = vld [vmem:[%s1423_s15] ss:$8 sps:$4 sm:$0xff]   ;;  %v1294_v20 = vld [vmem:[%s1423_s15 + $0x14] ss:$8 sps:$4 sm:$0xff]   ;;  %1223 = vmatprep.subr.bf16.mxu1 %v1317_v21 }
  0x12   : > { %547 = vmatprep.mubr.bf16.mxu0 %v1293_v11  ;;  %v1296_v23 = vld [vmem:[%s1423_s15 + $0x10] ss:$8 sps:$4 sm:$0xff]   ;;  %v1297_v24 = vld [vmem:[%s1423_s15 + $0x24] ss:$8 sps:$4 sm:$0xff]   ;;  %v1299_v25 = vld [vmem:[%s1423_s15 + $0x20] ss:$8 sps:$4 sm:$0xff]  }
  0x13   : > { %v1300_v26 = vld [vmem:[%s1423_s15 + $0x34] ss:$8 sps:$4 sm:$0xff]   ;;  %v1302_v27 = vld [vmem:[%s1423_s15 + $0x30] ss:$8 sps:$4 sm:$0xff]   ;;  %v1303_v28 = vld [vmem:[%s1423_s15 + $0x44] ss:$8 sps:$4 sm:$0xff]  }
  0x14   : > { %1146 = vmatpush3.bf16.msra.mxu0 %v1282_v7  ;;  %1224 = vmatpush3.bf16.msra.mxu1 %v1317_v21  ;;  %v1305_v29 = vld [vmem:[%s1423_s15 + $0x40] ss:$8 sps:$4 sm:$0xff]   ;;  %v1306_v30 = vld [vmem:[%s1423_s15 + $0x54] ss:$8 sps:$4 sm:$0xff]   ;;  %v1308_v31 = vld [vmem:[%s1423_s15 + $0x50] ss:$8 sps:$4 sm:$0xff]  }
  0x15   : > { %1147 = vmatprep.subr.bf16.mxu0 %v1283_v8  ;;  %1225 = vmatprep.subr.bf16.mxu1 %v1318_v22  ;;  %v1309_v32 = vld [vmem:[%s1423_s15 + $0x64] ss:$8 sps:$4 sm:$0xff]   ;;  %v1311_v33 = vld [vmem:[%s1423_s15 + $0x60] ss:$8 sps:$4 sm:$0xff]   ;;  %v1312_v34 = vld [vmem:[%s1423_s15 + $0x74] ss:$8 sps:$4 sm:$0xff]  }
  0x16   : > { %v1314_v35 = vld [vmem:[%s1423_s15 + $0x70] ss:$8 sps:$4 sm:$0xff]  }
  0x18   : > { %1148 = vmatpush3.bf16.msra.mxu0 %v1284_v9  ;;  %1226 = vmatpush3.bf16.msra.mxu1 %v1318_v22 }
  0x19   : > { %1149 = vmatprep.subr.bf16.mxu0 %v1285_v10  ;;  %1227 = vmatprep.subr.bf16.mxu1 %v1319_v36 }
  0x1c   : > { %1150 = vmatpush3.bf16.msra.mxu0 %v1286_v12  ;;  %1228 = vmatpush3.bf16.msra.mxu1 %v1319_v36 }
  0x1d   : > { %1151 = vmatprep.subr.bf16.mxu0 %v1287_v13  ;;  %1229 = vmatprep.subr.bf16.mxu1 %v1320_v37 }
  0x20   : > { %1152 = vmatpush3.bf16.msra.mxu0 %v1288_v14  ;;  %1230 = vmatpush3.bf16.msra.mxu1 %v1320_v37 }
  0x21   : > { %1153 = vmatprep.subr.bf16.mxu0 %v1289_v15  ;;  %1231 = vmatprep.subr.bf16.mxu1 %v1321_v38 }
  0x24   : > { %1154 = vmatpush3.bf16.msra.mxu0 %v1290_v16  ;;  %1232 = vmatpush3.bf16.msra.mxu1 %v1321_v38 }
  0x25   : > { %1233 = vmatprep.subr.bf16.mxu1 %v1322_v39 }
  0x27   : > { %548 = vmatmul.mubr.bf16.vlgmr.msra.gmra.mrb[0].mxu0 %v1291_v18 }
  0x28   : > { %555 = vmatprep.mubr.bf16.mxu0 %v1294_v20  ;;  %1234 = vmatpush3.bf16.msra.mxu1 %v1322_v39 }
  0x2f   : > { %556 = vmatmul.mubr.bf16.gmra.mrb[4].mxu0 %v1296_v23 }
  0x30   : > { %563 = vmatprep.mubr.bf16.mxu0 %v1297_v24 }
  0x37   : > { %564 = vmatmul.mubr.bf16.gmra.mrb[8].mxu0 %v1299_v25 }
  0x38   : > { %571 = vmatprep.mubr.bf16.mxu0 %v1300_v26 }
  0x3f   : > { %572 = vmatmul.mubr.bf16.gmra.mrb[12].mxu0 %v1302_v27 }
  0x40   : > { %579 = vmatprep.mubr.bf16.mxu0 %v1303_v28 }
  0x47   : > { %580 = vmatmul.mubr.bf16.gmra.mrb[16].mxu0 %v1305_v29 }
  0x48   : > { %587 = vmatprep.mubr.bf16.mxu0 %v1306_v30 }
  0x4f   : > { %588 = vmatmul.mubr.bf16.gmra.mrb[20].mxu0 %v1308_v31 }
  0x50   : > { %595 = vmatprep.mubr.bf16.mxu0 %v1309_v32 }
  0x57   : > { %596 = vmatmul.mubr.bf16.gmra.mrb[24].mxu0 %v1311_v33  ;;  %v1048_v33 = vld [vmem:[%s1515_s3] ss:$0 sm:$0xff] }
  0x58   : > { %603 = vmatprep.mubr.bf16.mxu0 %v1312_v34 }
  0x5f   : > { %604 = vmatmul.mubr.bf16.gmra.mrb[28].mxu0 %v1314_v35 }
  0xfa   : > { %v1155_v40 = vpop.f32.mrb[0].mxu0 }
  0xfb   : > { %v1156_v41 = vpop.f32.mrb[1].mxu0 }
  0xfc   : > { %v1157_v42 = vadd.f32 %v1156_v41, %v1155_v40  ;;  %v1158_v43 = vpop.f32.mrb[2].mxu0 }
  0xfd   : > { %v1159_v44 = vpop.f32.mrb[3].mxu0 }
  0xfe   : > { %v1160_v45 = vadd.f32 %v1159_v44, %v1158_v43 }
 0x100   : > { %v663_v46 = vpack.c.bf16 %v1160_v45, %v1157_v42 }
 0x102   : > { %v1161_v47 = vpop.f32.mrb[4].mxu0  ;;  %1235 = vmatprep.mubr.bf16.mxu1 %v663_v46 }
 0x103   : > { %v1162_v48 = vpop.f32.mrb[5].mxu0 }
 0x104   : > { %v1163_v49 = vadd.f32 %v1162_v48, %v1161_v47  ;;  %v1164_v50 = vpop.f32.mrb[6].mxu0 }
 0x105   : > { %v1165_v51 = vpop.f32.mrb[7].mxu0 }
 0x106   : > { %v1166_v52 = vadd.f32 %v1165_v51, %v1164_v50 }
 0x108   : > { %v664_v53 = vpack.c.bf16 %v1166_v52, %v1163_v49 }
 0x10a   : > { %v1167_v54 = vpop.f32.mrb[8].mxu0  ;;  %1236 = vmatmul.mubr.bf16.vlgmr.msra.gmra.mrb[0].mxu1 %v664_v53 }
 0x10b   : > { %v1168_v55 = vpop.f32.mrb[9].mxu0 }
 0x10c   : > { %v1169_v56 = vadd.f32 %v1168_v55, %v1167_v54  ;;  %v1170_v57 = vpop.f32.mrb[10].mxu0 }
 0x10d   : > { %v1171_v58 = vpop.f32.mrb[11].mxu0 }
 0x10e   : > { %v1172_v59 = vadd.f32 %v1171_v58, %v1170_v57 }
 0x110   : > { %v665_v60 = vpack.c.bf16 %v1172_v59, %v1169_v56 }
 0x112   : > { %v1173_v61 = vpop.f32.mrb[12].mxu0  ;;  %1239 = vmatprep.mubr.bf16.mxu1 %v665_v60 }
 0x113   : > { %v1174_v62 = vpop.f32.mrb[13].mxu0 }
 0x114   : > { %v1175_v63 = vadd.f32 %v1174_v62, %v1173_v61  ;;  %v1176_v0 = vpop.f32.mrb[14].mxu0 }
 0x115   : > { %v1177_v1 = vpop.f32.mrb[15].mxu0 }
 0x116   : > { %v1178_v2 = vadd.f32 %v1177_v1, %v1176_v0 }
 0x118   : > { %v666_v3 = vpack.c.bf16 %v1178_v2, %v1175_v63 }
 0x11a   : > { %v1179_v4 = vpop.f32.mrb[16].mxu0  ;;  %1240 = vmatmul.mubr.bf16.gmra.mrb[4].mxu1 %v666_v3 }
 0x11b   : > { %v1180_v5 = vpop.f32.mrb[17].mxu0 }
 0x11c   : > { %v1181_v6 = vadd.f32 %v1180_v5, %v1179_v4  ;;  %v1182_v7 = vpop.f32.mrb[18].mxu0 }
 0x11d   : > { %v1183_v8 = vpop.f32.mrb[19].mxu0 }
 0x11e   : > { %v1184_v9 = vadd.f32 %v1183_v8, %v1182_v7 }
 0x120   : > { %v667_v10 = vpack.c.bf16 %v1184_v9, %v1181_v6 }
 0x122   : > { %v1185_v11 = vpop.f32.mrb[20].mxu0  ;;  %1243 = vmatprep.mubr.bf16.mxu1 %v667_v10 }
 0x123   : > { %v1186_v12 = vpop.f32.mrb[21].mxu0 }
 0x124   : > { %v1187_v13 = vadd.f32 %v1186_v12, %v1185_v11  ;;  %v1188_v14 = vpop.f32.mrb[22].mxu0 }
 0x125   : > { %v1189_v15 = vpop.f32.mrb[23].mxu0 }
 0x126   : > { %v1190_v16 = vadd.f32 %v1189_v15, %v1188_v14 }
 0x128   : > { %v668_v17 = vpack.c.bf16 %v1190_v16, %v1187_v13 }
 0x12a   : > { %v1191_v18 = vpop.f32.mrb[24].mxu0  ;;  %1244 = vmatmul.mubr.bf16.gmra.mrb[8].mxu1 %v668_v17 }
 0x12b   : > { %v1192_v19 = vpop.f32.mrb[25].mxu0 }
 0x12c   : > { %v1193_v20 = vadd.f32 %v1192_v19, %v1191_v18  ;;  %v1194_v21 = vpop.f32.mrb[26].mxu0 }
 0x12d   : > { %v1195_v22 = vpop.f32.mrb[27].mxu0 }
 0x12e   : > { %v1196_v23 = vadd.f32 %v1195_v22, %v1194_v21 }
 0x130   : > { %v669_v24 = vpack.c.bf16 %v1196_v23, %v1193_v20 }
 0x132   : > { %v1197_v25 = vpop.f32.mrb[28].mxu0  ;;  %1247 = vmatprep.mubr.bf16.mxu1 %v669_v24 }
 0x133   : > { %v1198_v26 = vpop.f32.mrb[29].mxu0 }
 0x134   : > { %v1199_v27 = vadd.f32 %v1198_v26, %v1197_v25  ;;  %v1200_v28 = vpop.f32.mrb[30].mxu0 }
 0x135   : > { %v1201_v29 = vpop.f32.mrb[31].mxu0 }
 0x136   : > { %v1202_v30 = vadd.f32 %v1201_v29, %v1200_v28 }
 0x138   : > { %v670_v31 = vpack.c.bf16 %v1202_v30, %v1199_v27 }
 0x13a   : > { %1248 = vmatmul.mubr.bf16.gmra.mrb[12].mxu1 %v670_v31 }
 0x1dd   : > { %v1237_v32 = vpop.f32.mrb[0].mxu1 }
 0x1de   : > { %v776_v34 = vpop.f32.mrb[1].mxu1  ;;  %v785_v36 = vadd.f32 %v1237_v32, %v1048_v33 }
 0x1df   : > { %v1238_v35 = vpop.f32.mrb[2].mxu1  ;;  %v777_v39 = vadd.f32 %v1048_v33, %v776_v34 }
 0x1e0   : > { %v788_v37 = vadd.f32 %v1238_v35, %v1048_v33  ;;  %v779_v38 = vpop.f32.mrb[3].mxu1 }
 0x1e1   : > { %v780_v40 = vadd.f32 %v1048_v33, %v779_v38 }
 0x1e2   : > { %v1100_v41 = vpack.c.bf16 %v788_v37, %v785_v36 }
 0x1e3   : > { %v1095_v42 = vpack.c.bf16 %v780_v40, %v777_v39 }
 0x1e4   : > { %1132 = vst [vmem:[%s1493_s7 + $0x8] sm:$0xff] %v1100_v41  }
 0x1e5   : > { %1096 = vst [vmem:[%s1493_s7] sm:$0xff] %v1095_v42  }
 0x1ed   : > { %v1241_v43 = vpop.f32.mrb[4].mxu1 }
 0x1ee   : > { %v792_v44 = vpop.f32.mrb[5].mxu1  ;;  %v801_v46 = vadd.f32 %v1241_v43, %v1048_v33 }
 0x1ef   : > { %v1242_v45 = vpop.f32.mrb[6].mxu1  ;;  %v793_v49 = vadd.f32 %v1048_v33, %v792_v44 }
 0x1f0   : > { %v804_v47 = vadd.f32 %v1242_v45, %v1048_v33  ;;  %v795_v48 = vpop.f32.mrb[7].mxu1 }
 0x1f1   : > { %v796_v50 = vadd.f32 %v1048_v33, %v795_v48 }
 0x1f2   : > { %v1110_v51 = vpack.c.bf16 %v804_v47, %v801_v46 }
 0x1f3   : > { %v1105_v52 = vpack.c.bf16 %v796_v50, %v793_v49 }
 0x1f4   : > { %1134 = vst [vmem:[%s1493_s7 + $0x18] sm:$0xff] %v1110_v51  }
 0x1f5   : > { %1133 = vst [vmem:[%s1493_s7 + $0x10] sm:$0xff] %v1105_v52  }
 0x1fd   : > { %v1245_v53 = vpop.f32.mrb[8].mxu1 }
 0x1fe   : > { %v808_v54 = vpop.f32.mrb[9].mxu1  ;;  %v817_v56 = vadd.f32 %v1245_v53, %v1048_v33 }
 0x1ff   : > { %v1246_v55 = vpop.f32.mrb[10].mxu1  ;;  %v809_v59 = vadd.f32 %v1048_v33, %v808_v54 }
 0x200   : > { %v820_v57 = vadd.f32 %v1246_v55, %v1048_v33  ;;  %v811_v58 = vpop.f32.mrb[11].mxu1 }
 0x201   : > { %v812_v60 = vadd.f32 %v1048_v33, %v811_v58 }
 0x202   : > { %v1120_v61 = vpack.c.bf16 %v820_v57, %v817_v56 }
 0x203   : > { %v1115_v62 = vpack.c.bf16 %v812_v60, %v809_v59 }
 0x204   : > { %1136 = vst [vmem:[%s1493_s7 + $0x28] sm:$0xff] %v1120_v61  }
 0x205   : > { %1135 = vst [vmem:[%s1493_s7 + $0x20] sm:$0xff] %v1115_v62  }
 0x20d   : > { %v1249_v63 = vpop.f32.mrb[12].mxu1 }
 0x20e   : > { %v824_v0 = vpop.f32.mrb[13].mxu1  ;;  %v833_v2 = vadd.f32 %v1249_v63, %v1048_v33 }
 0x20f   : > { %v1250_v1 = vpop.f32.mrb[14].mxu1  ;;  %v825_v5 = vadd.f32 %v1048_v33, %v824_v0 }
 0x210   : > { %v836_v3 = vadd.f32 %v1250_v1, %v1048_v33  ;;  %v827_v4 = vpop.f32.mrb[15].mxu1 }
 0x211   : > { %v828_v6 = vadd.f32 %v1048_v33, %v827_v4 }
 0x212   : > { %v1130_v7 = vpack.c.bf16 %v836_v3, %v833_v2 }
 0x213   : > { %v1125_v8 = vpack.c.bf16 %v828_v6, %v825_v5 }
 0x214   : > { %1138 = vst [vmem:[%s1493_s7 + $0x38] sm:$0xff] %v1130_v7  }
 0x215   : > { %1137 = vst [vmem:[%s1493_s7 + $0x30] sm:$0xff] %v1125_v8  }
 0x216 PF: > { %s14_s17 = sadd.s32 1, %s1345_s17   ;;  %s1517_s15 = smov %s1341_s16 }
 0x217   : > { %p11_p5 = scmp.ge.s32.totalorder %s14_s17, 4   ;;  %s1518_s16 = smov %s1520_s18 }
 0x219   :  { %13 = sbr.rel (!%p11_p5) target bundleno = 2 (0x2), region = 77 }

// kernel: gcn_forward.3
= control target key start
LH: loop header
LB: loop body
LE: loop exit
PB: predicated region body
PF: predicated region fallthrough
CT: control target
= control target key end

     0   :  { %s1420_s15 = smov 0   ;;  %s1422_s16 = smov 0   ;;  %s1578_s0 = inlined_call_operand.vmem [shape: bf16[256,256], index: 0, kind: input, shape index: {}]   ;;  %s1579_s1 = inlined_call_operand.vmem [shape: bf16[256,128], index: 1, kind: input, shape index: {}]   ;;  %s1580_s2 = inlined_call_operand.vmem [shape: bf16[128,128], index: 2, kind: input, shape index: {}]   ;;  %s1581_s3 = inlined_call_operand.vmem [shape: f32[1,128], index: 3, kind: input, shape index: {}]   ;;  %s1582_s4 = inlined_call_operand.vmem [shape: bf16[256,128], index: 4, kind: output, shape index: {}]  }
   0x1   :  { %s1424_s17 = smov 0  }
   0x2 LB: > { %s26_s18 = sadd.s32 1, %s1389_s16  ;;  %p1026_p0 = scmp.ge.s32.totalorder %s1393_s17, 1  ;;  %s1393_s17 = sphi %s1424_s17, %s14_s17   ;;  %s1389_s16 = sphi %s1422_s16, %s1584_s16   ;;  %s1385_s15 = sphi %s1420_s15, %s1583_s15  }
   0x3   : > { %p28_p1 = scmp.ge.s32.totalorder %s26_s18, 2  ;;  %p194_p2 = scmp.lt.s32.totalorder %s1393_s17, 3 }
   0x5   : > { %s1586_s18 = smov (%p28_p1, %s26_s18), 0  ;;  %p195_p3 = pnand %p1026_p0, %p194_p2 }
   0x6   : > { %v1291_v0 = vld [vmem:[%s1579_s1 + $0x40] sm:$0xff] (!%p195_p3)   ;;  %s1027_s21 = sshll.u32 (!%p195_p3), %s1385_s15, 4  ;;  %v1293_v2 = vld [vmem:[%s1579_s1 + $0x48] sm:$0xff] (!%p195_p3)   ;;  %v1295_v4 = vld [vmem:[%s1579_s1 + $0x50] sm:$0xff] (!%p195_p3)  }
   0x7   : > { %198 = sbr.rel (%p195_p3) target bundleno = 545 (0x221), region = 36  ;;  %v1292_v1 = vld [vmem:[%s1579_s1] sm:$0xff] (!%p195_p3)   ;;  %1155 = vmatprep.subr.bf16.mxu0 (!%p195_p3), %v1291_v0  ;;  %v1294_v3 = vld [vmem:[%s1579_s1 + $0x8] sm:$0xff] (!%p195_p3)   ;;  %p232_p4 = scmp.lt.s32.totalorder (!%p195_p3), %s1027_s21, 31  ;;  %v1296_v5 = vld [vmem:[%s1579_s1 + $0x10] sm:$0xff] (!%p195_p3)  }
   0x8   : > { %1156 = vmatpush3.bf16.msra.mxu0 (!%p195_p3), %v1292_v1  ;;  %v1297_v6 = vld [vmem:[%s1579_s1 + $0x58] sm:$0xff] (!%p195_p3)   ;;  %v1299_v8 = vld [vmem:[%s1579_s1 + $0x60] sm:$0xff] (!%p195_p3)   ;;  %v1301_v10 = vld [vmem:[%s1579_s1 + $0x68] sm:$0xff] (!%p195_p3)  }
   0x9   : > { %1157 = vmatprep.subr.bf16.mxu0 (!%p195_p3), %v1293_v2  ;;  %v1298_v7 = vld [vmem:[%s1579_s1 + $0x18] sm:$0xff] (!%p195_p3)   ;;  %v1300_v9 = vld [vmem:[%s1579_s1 + $0x20] sm:$0xff] (!%p195_p3)   ;;  %v1302_v12 = vld [vmem:[%s1579_s1 + $0x28] sm:$0xff] (!%p195_p3)  }
   0xa   : > { %v1303_v13 = vld [vmem:[%s1579_s1 + $0x70] sm:$0xff] (!%p195_p3)   ;;  %v1305_v15 = vld [vmem:[%s1579_s1 + $0x78] sm:$0xff] (!%p195_p3)   ;;  %v1331_v17 = vld [vmem:[%s1580_s2] sm:$0xff] (!%p195_p3)  }
   0xb   : > { %v1304_v14 = vld [vmem:[%s1579_s1 + $0x30] sm:$0xff] (!%p195_p3)   ;;  %v1306_v16 = vld [vmem:[%s1579_s1 + $0x38] sm:$0xff] (!%p195_p3)   ;;  %v1332_v19 = vld [vmem:[%s1580_s2 + $0x8] sm:$0xff] (!%p195_p3)   ;;  %1235 = vmatprep.subr.bf16.mxu1 (!%p195_p3), %v1331_v17 }
   0xc   : > { %1158 = vmatpush3.bf16.msra.mxu0 (!%p195_p3), %v1294_v3  ;;  %1236 = vmatpush3.bf16.msra.mxu1 (!%p195_p3), %v1331_v17  ;;  %v1333_v21 = vld [vmem:[%s1580_s2 + $0x10] sm:$0xff] (!%p195_p3)   ;;  %v1334_v22 = vld [vmem:[%s1580_s2 + $0x18] sm:$0xff] (!%p195_p3)   ;;  %v1335_v36 = vld [vmem:[%s1580_s2 + $0x20] sm:$0xff] (!%p195_p3)  }
   0xd   : > { %1159 = vmatprep.subr.bf16.mxu0 (!%p195_p3), %v1295_v4  ;;  %1237 = vmatprep.subr.bf16.mxu1 (!%p195_p3), %v1332_v19  ;;  %v1336_v37 = vld [vmem:[%s1580_s2 + $0x28] sm:$0xff] (!%p195_p3)   ;;  %v1337_v38 = vld [vmem:[%s1580_s2 + $0x30] sm:$0xff] (!%p195_p3)   ;;  %v1338_v39 = vld [vmem:[%s1580_s2 + $0x38] sm:$0xff] (!%p195_p3)  }
   0xe   : > { %s1588_s21 = smov (!%p232_p4, %s1027_s21), 31 }
   0xf   : > { %s1091_s10 = sshll.u32 %s1588_s21, 3  ;;  %s1031_s30 = sshll.u32 %s1588_s21, 2 }
  0x10   : > { %1160 = vmatpush3.bf16.msra.mxu0 %v1296_v5  ;;  %s1471_s15 = scalar_lea.vmem %s1578_s0, %s1091_s10  ;;  %1238 = vmatpush3.bf16.msra.mxu1 %v1332_v19  ;;  %s1547_s7 = scalar_lea.vmem %s1582_s4, %s1031_s30 }
  0x11   : > { %1161 = vmatprep.subr.bf16.mxu0 %v1297_v6  ;;  %v1309_v11 = vld [vmem:[%s1471_s15 + $0x4] ss:$8 sps:$4 sm:$0xff]   ;;  %v1307_v18 = vld [vmem:[%s1471_s15] ss:$8 sps:$4 sm:$0xff]   ;;  %v1310_v20 = vld [vmem:[%s1471_s15 + $0x14] ss:$8 sps:$4 sm:$0xff]   ;;  %1239 = vmatprep.subr.bf16.mxu1 %v1333_v21 }
  0x12   : > { %547 = vmatprep.mubr.bf16.mxu0 %v1309_v11  ;;  %v1312_v23 = vld [vmem:[%s1471_s15 + $0x10] ss:$8 sps:$4 sm:$0xff]   ;;  %v1313_v24 = vld [vmem:[%s1471_s15 + $0x24] ss:$8 sps:$4 sm:$0xff]   ;;  %v1315_v25 = vld [vmem:[%s1471_s15 + $0x20] ss:$8 sps:$4 sm:$0xff]  }
  0x13   : > { %v1316_v26 = vld [vmem:[%s1471_s15 + $0x34] ss:$8 sps:$4 sm:$0xff]   ;;  %v1318_v27 = vld [vmem:[%s1471_s15 + $0x30] ss:$8 sps:$4 sm:$0xff]   ;;  %v1319_v28 = vld [vmem:[%s1471_s15 + $0x44] ss:$8 sps:$4 sm:$0xff]  }
  0x14   : > { %1162 = vmatpush3.bf16.msra.mxu0 %v1298_v7  ;;  %1240 = vmatpush3.bf16.msra.mxu1 %v1333_v21  ;;  %v1321_v29 = vld [vmem:[%s1471_s15 + $0x40] ss:$8 sps:$4 sm:$0xff]   ;;  %v1322_v30 = vld [vmem:[%s1471_s15 + $0x54] ss:$8 sps:$4 sm:$0xff]   ;;  %v1324_v31 = vld [vmem:[%s1471_s15 + $0x50] ss:$8 sps:$4 sm:$0xff]  }
  0x15   : > { %1163 = vmatprep.subr.bf16.mxu0 %v1299_v8  ;;  %1241 = vmatprep.subr.bf16.mxu1 %v1334_v22  ;;  %v1325_v32 = vld [vmem:[%s1471_s15 + $0x64] ss:$8 sps:$4 sm:$0xff]   ;;  %v1327_v33 = vld [vmem:[%s1471_s15 + $0x60] ss:$8 sps:$4 sm:$0xff]   ;;  %v1328_v34 = vld [vmem:[%s1471_s15 + $0x74] ss:$8 sps:$4 sm:$0xff]  }
  0x16   : > { %v1330_v35 = vld [vmem:[%s1471_s15 + $0x70] ss:$8 sps:$4 sm:$0xff]  }
  0x18   : > { %1164 = vmatpush3.bf16.msra.mxu0 %v1300_v9  ;;  %1242 = vmatpush3.bf16.msra.mxu1 %v1334_v22 }
  0x19   : > { %1165 = vmatprep.subr.bf16.mxu0 %v1301_v10  ;;  %1243 = vmatprep.subr.bf16.mxu1 %v1335_v36 }
  0x1c   : > { %1166 = vmatpush3.bf16.msra.mxu0 %v1302_v12  ;;  %1244 = vmatpush3.bf16.msra.mxu1 %v1335_v36 }
  0x1d   : > { %1167 = vmatprep.subr.bf16.mxu0 %v1303_v13  ;;  %1245 = vmatprep.subr.bf16.mxu1 %v1336_v37 }
  0x20   : > { %1168 = vmatpush3.bf16.msra.mxu0 %v1304_v14  ;;  %1246 = vmatpush3.bf16.msra.mxu1 %v1336_v37 }
  0x21   : > { %1169 = vmatprep.subr.bf16.mxu0 %v1305_v15  ;;  %1247 = vmatprep.subr.bf16.mxu1 %v1337_v38 }
  0x24   : > { %1170 = vmatpush3.bf16.msra.mxu0 %v1306_v16  ;;  %1248 = vmatpush3.bf16.msra.mxu1 %v1337_v38 }
  0x25   : > { %1249 = vmatprep.subr.bf16.mxu1 %v1338_v39 }
  0x27   : > { %548 = vmatmul.mubr.bf16.vlgmr.msra.gmra.mrb[0].mxu0 %v1307_v18 }
  0x28   : > { %555 = vmatprep.mubr.bf16.mxu0 %v1310_v20  ;;  %1250 = vmatpush3.bf16.msra.mxu1 %v1338_v39 }
  0x2f   : > { %556 = vmatmul.mubr.bf16.gmra.mrb[4].mxu0 %v1312_v23 }
  0x30   : > { %563 = vmatprep.mubr.bf16.mxu0 %v1313_v24 }
  0x37   : > { %564 = vmatmul.mubr.bf16.gmra.mrb[8].mxu0 %v1315_v25 }
  0x38   : > { %571 = vmatprep.mubr.bf16.mxu0 %v1316_v26 }
  0x3f   : > { %572 = vmatmul.mubr.bf16.gmra.mrb[12].mxu0 %v1318_v27 }
  0x40   : > { %579 = vmatprep.mubr.bf16.mxu0 %v1319_v28 }
  0x47   : > { %580 = vmatmul.mubr.bf16.gmra.mrb[16].mxu0 %v1321_v29 }
  0x48   : > { %587 = vmatprep.mubr.bf16.mxu0 %v1322_v30 }
  0x4f   : > { %588 = vmatmul.mubr.bf16.gmra.mrb[20].mxu0 %v1324_v31 }
  0x50   : > { %595 = vmatprep.mubr.bf16.mxu0 %v1325_v32  ;;  %v1537_v32 = vld [vmem:[%s1581_s3] ss:$0 sm:$0xff] }
  0x57   : > { %596 = vmatmul.mubr.bf16.gmra.mrb[24].mxu0 %v1327_v33 }
  0x58   : > { %603 = vmatprep.mubr.bf16.mxu0 %v1328_v34 }
  0x5f   : > { %604 = vmatmul.mubr.bf16.gmra.mrb[28].mxu0 %v1330_v35 }
  0xfa   : > { %v1171_v40 = vpop.f32.mrb[0].mxu0 }
  0xfb   : > { %v1172_v41 = vpop.f32.mrb[1].mxu0 }
  0xfc   : > { %v1173_v42 = vadd.f32 %v1172_v41, %v1171_v40  ;;  %v1174_v43 = vpop.f32.mrb[2].mxu0 }
  0xfd   : > { %v1175_v44 = vpop.f32.mrb[3].mxu0 }
  0xfe   : > { %v1176_v45 = vadd.f32 %v1175_v44, %v1174_v43 }
 0x100   : > { %v663_v46 = vpack.c.bf16 %v1176_v45, %v1173_v42 }
 0x102   : > { %v1177_v47 = vpop.f32.mrb[4].mxu0  ;;  %1251 = vmatprep.mubr.bf16.mxu1 %v663_v46 }
 0x103   : > { %v1178_v48 = vpop.f32.mrb[5].mxu0 }
 0x104   : > { %v1179_v49 = vadd.f32 %v1178_v48, %v1177_v47  ;;  %v1180_v50 = vpop.f32.mrb[6].mxu0 }
 0x105   : > { %v1181_v51 = vpop.f32.mrb[7].mxu0 }
 0x106   : > { %v1182_v52 = vadd.f32 %v1181_v51, %v1180_v50 }
 0x108   : > { %v664_v53 = vpack.c.bf16 %v1182_v52, %v1179_v49 }
 0x10a   : > { %v1183_v54 = vpop.f32.mrb[8].mxu0  ;;  %1252 = vmatmul.mubr.bf16.vlgmr.msra.gmra.mrb[0].mxu1 %v664_v53 }
 0x10b   : > { %v1184_v55 = vpop.f32.mrb[9].mxu0 }
 0x10c   : > { %v1185_v56 = vadd.f32 %v1184_v55, %v1183_v54  ;;  %v1186_v57 = vpop.f32.mrb[10].mxu0 }
 0x10d   : > { %v1187_v58 = vpop.f32.mrb[11].mxu0 }
 0x10e   : > { %v1188_v59 = vadd.f32 %v1187_v58, %v1186_v57 }
 0x110   : > { %v665_v60 = vpack.c.bf16 %v1188_v59, %v1185_v56 }
 0x112   : > { %v1189_v61 = vpop.f32.mrb[12].mxu0  ;;  %1255 = vmatprep.mubr.bf16.mxu1 %v665_v60 }
 0x113   : > { %v1190_v62 = vpop.f32.mrb[13].mxu0 }
 0x114   : > { %v1191_v63 = vadd.f32 %v1190_v62, %v1189_v61  ;;  %v1192_v0 = vpop.f32.mrb[14].mxu0 }
 0x115   : > { %v1193_v1 = vpop.f32.mrb[15].mxu0 }
 0x116   : > { %v1194_v2 = vadd.f32 %v1193_v1, %v1192_v0 }
 0x118   : > { %v666_v3 = vpack.c.bf16 %v1194_v2, %v1191_v63 }
 0x11a   : > { %v1195_v4 = vpop.f32.mrb[16].mxu0  ;;  %1256 = vmatmul.mubr.bf16.gmra.mrb[4].mxu1 %v666_v3 }
 0x11b   : > { %v1196_v5 = vpop.f32.mrb[17].mxu0 }
 0x11c   : > { %v1197_v6 = vadd.f32 %v1196_v5, %v1195_v4  ;;  %v1198_v7 = vpop.f32.mrb[18].mxu0 }
 0x11d   : > { %v1199_v8 = vpop.f32.mrb[19].mxu0 }
 0x11e   : > { %v1200_v9 = vadd.f32 %v1199_v8, %v1198_v7 }
 0x120   : > { %v667_v10 = vpack.c.bf16 %v1200_v9, %v1197_v6 }
 0x122   : > { %v1201_v11 = vpop.f32.mrb[20].mxu0  ;;  %1259 = vmatprep.mubr.bf16.mxu1 %v667_v10 }
 0x123   : > { %v1202_v12 = vpop.f32.mrb[21].mxu0 }
 0x124   : > { %v1203_v13 = vadd.f32 %v1202_v12, %v1201_v11  ;;  %v1204_v14 = vpop.f32.mrb[22].mxu0 }
 0x125   : > { %v1205_v15 = vpop.f32.mrb[23].mxu0 }
 0x126   : > { %v1206_v16 = vadd.f32 %v1205_v15, %v1204_v14 }
 0x128   : > { %v668_v17 = vpack.c.bf16 %v1206_v16, %v1203_v13 }
 0x12a   : > { %v1207_v18 = vpop.f32.mrb[24].mxu0  ;;  %1260 = vmatmul.mubr.bf16.gmra.mrb[8].mxu1 %v668_v17 }
 0x12b   : > { %v1208_v19 = vpop.f32.mrb[25].mxu0 }
 0x12c   : > { %v1209_v20 = vadd.f32 %v1208_v19, %v1207_v18  ;;  %v1210_v21 = vpop.f32.mrb[26].mxu0 }
 0x12d   : > { %v1211_v22 = vpop.f32.mrb[27].mxu0 }
 0x12e   : > { %v1212_v23 = vadd.f32 %v1211_v22, %v1210_v21 }
 0x130   : > { %v669_v24 = vpack.c.bf16 %v1212_v23, %v1209_v20 }
 0x132   : > { %v1213_v25 = vpop.f32.mrb[28].mxu0  ;;  %1263 = vmatprep.mubr.bf16.mxu1 %v669_v24 }
 0x133   : > { %v1214_v26 = vpop.f32.mrb[29].mxu0 }
 0x134   : > { %v1215_v27 = vadd.f32 %v1214_v26, %v1213_v25  ;;  %v1216_v28 = vpop.f32.mrb[30].mxu0 }
 0x135   : > { %v1217_v29 = vpop.f32.mrb[31].mxu0 }
 0x136   : > { %v1218_v30 = vadd.f32 %v1217_v29, %v1216_v28 }
 0x138   : > { %v670_v31 = vpack.c.bf16 %v1218_v30, %v1215_v27 }
 0x13a   : > { %1264 = vmatmul.mubr.bf16.gmra.mrb[12].mxu1 %v670_v31 }
 0x1dd   : > { %v1253_v33 = vpop.f32.mrb[0].mxu1 }
 0x1de   : > { %v785_v34 = vadd.f32 %v1253_v33, %v1537_v32  ;;  %v776_v35 = vpop.f32.mrb[1].mxu1 }
 0x1df   : > { %v777_v36 = vadd.f32 %v1537_v32, %v776_v35  ;;  %v1254_v37 = vpop.f32.mrb[2].mxu1 }
 0x1e0   : > { %1339 = vtanh.f32 %v785_v34  ;;  %v788_v38 = vadd.f32 %v1254_v37, %v1537_v32  ;;  %v779_v39 = vpop.f32.mrb[3].mxu1 }
 0x1e1   : > { %1341 = vtanh.f32 %v777_v36  ;;  %v780_v40 = vadd.f32 %v1537_v32, %v779_v39 }
 0x1e2   : > { %1343 = vtanh.f32 %v788_v38 }
 0x1e3   : > { %1345 = vtanh.f32 %v780_v40 }
 0x1ea   : > { %v1340_v41 = vpop.eup %1339 }
 0x1eb   : > { %v1342_v42 = vpop.eup %1341 }
 0x1ec   : > { %v1344_v43 = vpop.eup %1343 }
 0x1ed   : > { %v1346_v44 = vpop.eup %1345  ;;  %v1116_v45 = vpack.c.bf16 %v1344_v43, %v1340_v41  ;;  %v1257_v46 = vpop.f32.mrb[4].mxu1 }
 0x1ee   : > { %v1111_v47 = vpack.c.bf16 %v1346_v44, %v1342_v42  ;;  %v801_v48 = vadd.f32 %v1257_v46, %v1537_v32  ;;  %v792_v49 = vpop.f32.mrb[5].mxu1 }
 0x1ef   : > { %1148 = vst [vmem:[%s1547_s7 + $0x8] sm:$0xff] %v1116_v45   ;;  %v793_v50 = vadd.f32 %v1537_v32, %v792_v49  ;;  %v1258_v51 = vpop.f32.mrb[6].mxu1 }
 0x1f0   : > { %1112 = vst [vmem:[%s1547_s7] sm:$0xff] %v1111_v47   ;;  %1347 = vtanh.f32 %v801_v48  ;;  %v804_v52 = vadd.f32 %v1258_v51, %v1537_v32  ;;  %v795_v53 = vpop.f32.mrb[7].mxu1 }
 0x1f1   : > { %1349 = vtanh.f32 %v793_v50  ;;  %v796_v54 = vadd.f32 %v1537_v32, %v795_v53 }
 0x1f2   : > { %1351 = vtanh.f32 %v804_v52 }
 0x1f3   : > { %1353 = vtanh.f32 %v796_v54 }
 0x1fa   : > { %v1348_v55 = vpop.eup %1347 }
 0x1fb   : > { %v1350_v56 = vpop.eup %1349 }
 0x1fc   : > { %v1352_v57 = vpop.eup %1351 }
 0x1fd   : > { %v1354_v58 = vpop.eup %1353  ;;  %v1126_v59 = vpack.c.bf16 %v1352_v57, %v1348_v55  ;;  %v1261_v60 = vpop.f32.mrb[8].mxu1 }
 0x1fe   : > { %v1121_v61 = vpack.c.bf16 %v1354_v58, %v1350_v56  ;;  %v817_v62 = vadd.f32 %v1261_v60, %v1537_v32  ;;  %v808_v63 = vpop.f32.mrb[9].mxu1 }
 0x1ff   : > { %1150 = vst [vmem:[%s1547_s7 + $0x18] sm:$0xff] %v1126_v59   ;;  %v809_v0 = vadd.f32 %v1537_v32, %v808_v63  ;;  %v1262_v1 = vpop.f32.mrb[10].mxu1 }
 0x200   : > { %1149 = vst [vmem:[%s1547_s7 + $0x10] sm:$0xff] %v1121_v61   ;;  %1355 = vtanh.f32 %v817_v62  ;;  %v820_v2 = vadd.f32 %v1262_v1, %v1537_v32  ;;  %v811_v3 = vpop.f32.mrb[11].mxu1 }
 0x201   : > { %1357 = vtanh.f32 %v809_v0  ;;  %v812_v4 = vadd.f32 %v1537_v32, %v811_v3 }
 0x202   : > { %1359 = vtanh.f32 %v820_v2 }
 0x203   : > { %1361 = vtanh.f32 %v812_v4 }
 0x20a   : > { %v1356_v5 = vpop.eup %1355 }
 0x20b   : > { %v1358_v6 = vpop.eup %1357 }
 0x20c   : > { %v1360_v7 = vpop.eup %1359 }
 0x20d   : > { %v1362_v8 = vpop.eup %1361  ;;  %v1136_v9 = vpack.c.bf16 %v1360_v7, %v1356_v5  ;;  %v1265_v10 = vpop.f32.mrb[12].mxu1 }
 0x20e   : > { %v1131_v11 = vpack.c.bf16 %v1362_v8, %v1358_v6  ;;  %v833_v12 = vadd.f32 %v1265_v10, %v1537_v32  ;;  %v824_v13 = vpop.f32.mrb[13].mxu1 }
 0x20f   : > { %1152 = vst [vmem:[%s1547_s7 + $0x28] sm:$0xff] %v1136_v9   ;;  %v825_v14 = vadd.f32 %v1537_v32, %v824_v13  ;;  %v1266_v15 = vpop.f32.mrb[14].mxu1 }
 0x210   : > { %1151 = vst [vmem:[%s1547_s7 + $0x20] sm:$0xff] %v1131_v11   ;;  %1363 = vtanh.f32 %v833_v12  ;;  %v836_v16 = vadd.f32 %v1266_v15, %v1537_v32  ;;  %v827_v17 = vpop.f32.mrb[15].mxu1 }
 0x211   : > { %1365 = vtanh.f32 %v825_v14  ;;  %v828_v18 = vadd.f32 %v1537_v32, %v827_v17 }
 0x212   : > { %1367 = vtanh.f32 %v836_v16 }
 0x213   : > { %1369 = vtanh.f32 %v828_v18 }
 0x21a   : > { %v1364_v19 = vpop.eup %1363 }
 0x21b   : > { %v1366_v20 = vpop.eup %1365 }
 0x21c   : > { %v1368_v21 = vpop.eup %1367 }
 0x21d   : > { %v1370_v22 = vpop.eup %1369  ;;  %v1146_v23 = vpack.c.bf16 %v1368_v21, %v1364_v19 }
 0x21e   : > { %v1141_v24 = vpack.c.bf16 %v1370_v22, %v1366_v20 }
 0x21f   : > { %1154 = vst [vmem:[%s1547_s7 + $0x38] sm:$0xff] %v1146_v23  }
 0x220   : > { %1153 = vst [vmem:[%s1547_s7 + $0x30] sm:$0xff] %v1141_v24  }
 0x221 PF: > { %s14_s17 = sadd.s32 1, %s1393_s17   ;;  %s1583_s15 = smov %s1389_s16 }
 0x222   : > { %p11_p5 = scmp.ge.s32.totalorder %s14_s17, 4   ;;  %s1584_s16 = smov %s1586_s18 }
 0x224   :  { %13 = sbr.rel (!%p11_p5) target bundleno = 2 (0x2), region = 77 }

</bundles_post_ra>
